<compile_context>
chip_gen: v7x
topology: tpu7x:2x2x1
jax: 0.10.0
libtpu: 0.0.40
codegen_flags: <defaults>
</compile_context>

<pallas_src>
import jax
import jax.numpy as jnp
from jax.experimental import pallas as pl
from jax.experimental.pallas import tpu as pltpu
import numpy as np


def attention_kernel(enc_ref, dec_ref, mask_ref, we_ref, wd_ref, wo_ref,
                     out_ref):
    bb, t, e = enc_ref.shape
    h = we_ref.shape[1]

    enc = enc_ref[...]                                      # [Bb, T, E]

    # Encoder projection as ONE big-M MXU matmul.  T is padded to a multiple
    # of 8 in the wrapper, so this flatten is a pure layout no-op.
    proj = jnp.dot(enc.reshape(bb * t, e), we_ref[...],
                   preferred_element_type=jnp.float32)      # [Bb*T, H]
    proj = proj.reshape(bb, t, h)                           # [Bb, T, H]

    # Decoder projection fused in-kernel: [Bb, D] @ [D, H].  w_d's index_map
    # is constant, so it stays resident across grid steps (no re-DMA).
    dproj = jnp.dot(dec_ref[...], wd_ref[...],
                    preferred_element_type=jnp.float32)     # [Bb, H]

    hid = jnp.tanh(proj + dproj[:, None, :])                # [Bb, T, H]

    # scores[b, t] = <hid[b, t, :], w_out>   (lane reduce over H)
    scores = jnp.sum(hid * wo_ref[...][None, :, :], axis=-1)   # [Bb, T]

    # Large-finite mask value: exp underflows to exact 0 for masked positions,
    # avoiding the inf - inf NaN path of the -inf reference.
    scores = jnp.where(mask_ref[...] > 0.0, scores, jnp.float32(-1e30))

    # Softmax along the lane (T) axis.
    m = jnp.max(scores, axis=-1, keepdims=True)             # [Bb, 1]
    ex = jnp.exp(scores - m)                                 # [Bb, T]
    denom = jnp.sum(ex, axis=-1, keepdims=True)              # [Bb, 1]
    # approx=False -> exact divide (meets 1e-5 tol); approx=True moves it to
    # the EUP slot if looser tolerance is acceptable.
    probs = ex * pl.reciprocal(denom, approx=False)          # [Bb, T]

    # attn[b, :] = sum_t probs[b, t] * enc[b, t, :]
    attn = jnp.sum(probs[:, :, None] * enc, axis=1)          # [Bb, E]

    # Single lane-concatenated output slab -> one store path per block.
    out_ref[...] = jnp.concatenate([attn, probs], axis=-1).astype(out_ref.dtype)


def _round_up(x, m):
    return ((x + m - 1) // m) * m


def attention_layer(enc, dec, inp_mask, w_e, w_d, w_out, *, block_b=None,
                    vmem_limit_bytes=32 * 1024 * 1024):
    """Pallas implementation of AttentionLayer.forward.

    enc: [B, T, E] f32, dec: [B, D] f32, inp_mask: [B, T] f32 (1/0).
    Returns (attn [B, E], probs [B, T]).
    """
    B, T, E = enc.shape
    D = dec.shape[1]
    H = w_e.shape[1]

    # Pad T to a multiple of 8 so the in-kernel flatten is relayout-free for
    # any T.  Padded positions are masked out (mask=0) -> exact-0 probs.
    Tp = _round_up(T, 8)
    if Tp != T:
        enc = jnp.pad(enc, ((0, 0), (0, Tp - T), (0, 0)))
        inp_mask = jnp.pad(inp_mask, ((0, 0), (0, Tp - T)))

    # ---- batch-block selection: MXU-fill target, bounded by a VMEM budget
    # that is safe on every generation's default scoped VMEM (v5e 16 MiB,
    # v6e/v7x 32 MiB) and well under v7x's 64 MiB physical VMEM. ----
    if block_b is None:
        bb_mxu = pl.cdiv(256, Tp)          # bb*T >= 256 rows per MXU pass
        # per-batch-row f32 bytes: double-buffered inputs + output slab +
        # ~4 temporaries of [T, H] (proj / hid / ex / scratch) + the enc copy.
        per_row = 4 * (2 * (Tp * E + D + Tp) + 2 * (E + Tp)
                       + 4 * Tp * H + Tp * E)
        bb_vmem = max(8, (12 * 1024 * 1024) // max(per_row, 1))
        block_b = max(8, min(bb_mxu, bb_vmem))
    bb = min(block_b, B)

    if bb >= B:
        bb = B                              # one block == full arrays
        B_pad = B
    else:
        bb = max(8, (bb // 8) * 8)          # sublane-aligned partial blocks
        B_pad = _round_up(B, bb)

    if B_pad != B:
        pad = B_pad - B
        enc = jnp.pad(enc, ((0, pad), (0, 0), (0, 0)))
        dec = jnp.pad(dec, ((0, pad), (0, 0)))
        inp_mask = jnp.pad(inp_mask, ((0, pad), (0, 0)))

    mask_f32 = inp_mask.astype(jnp.float32)
    wo_row = w_out.reshape(1, H)
    grid = (B_pad // bb,)

    cost = pl.CostEstimate(
        flops=2 * B_pad * Tp * E * H + 2 * B_pad * D * H
              + 4 * B_pad * Tp * H + 2 * B_pad * Tp * E,
        transcendentals=B_pad * Tp * H + B_pad * Tp,
        bytes_accessed=4 * (B_pad * Tp * E + B_pad * D + B_pad * Tp
                            + E * H + D * H + H + B_pad * (E + Tp)),
    )

    out = pl.pallas_call(
        attention_kernel,
        out_shape=jax.ShapeDtypeStruct((B_pad, E + Tp), jnp.float32),
        grid_spec=pltpu.PrefetchScalarGridSpec(
            num_scalar_prefetch=0,
            grid=grid,
            in_specs=[
                pl.BlockSpec((bb, Tp, E), lambda b: (b, 0, 0)),   # enc
                pl.BlockSpec((bb, D), lambda b: (b, 0)),          # dec
                pl.BlockSpec((bb, Tp), lambda b: (b, 0)),         # mask
                pl.BlockSpec((E, H), lambda b: (0, 0)),           # w_e (shared)
                pl.BlockSpec((D, H), lambda b: (0, 0)),           # w_d (shared)
                pl.BlockSpec((1, H), lambda b: (0, 0)),           # w_out row
            ],
            out_specs=pl.BlockSpec((bb, E + Tp), lambda b: (b, 0)),
        ),
        compiler_params=pltpu.CompilerParams(
            dimension_semantics=("parallel",),
            vmem_limit_bytes=vmem_limit_bytes),
        cost_estimate=cost,
    )(enc, dec, mask_f32, w_e, w_d, wo_row)

    attn = out[:B, :E]
    probs = out[:B, E:E + T]
    return attn, probs


def attention_layer_ref(enc, dec, inp_mask, w_e, w_d, w_out):
    """Pure-JAX reference matching the PyTorch forward exactly."""
    dec3 = dec[:, None, :]
    a_t = jnp.tanh(enc @ w_e + dec3 @ w_d) @ w_out          # [B, T, 1]
    a_t = jnp.where(inp_mask[:, :, None] > 0.0, a_t, -jnp.inf)
    a_t = a_t[..., 0]                                        # [B, T]
    probs = jax.nn.softmax(a_t, axis=-1)
    attn = jnp.sum(probs[:, :, None] * enc, axis=1)          # [B, E]
    return attn, probs


if __name__ == "__main__":
    # Small shapes consistent with the module's forward.
    B, T = 16, 8          # batch_size, ninp
    ENC, DEC, HID = 16, 32, 32

    key = jax.random.PRNGKey(0)
    k_enc, k_dec, k_we, k_wd, k_wo, k_len = jax.random.split(key, 6)

    enc = jax.random.normal(k_enc, (B, T, ENC), dtype=jnp.float32)
    dec = jax.random.normal(k_dec, (B, DEC), dtype=jnp.float32)

    # Parameter init mimicking torch.rand (uniform [0, 1)).
    w_e = jax.random.uniform(k_we, (ENC, HID), dtype=jnp.float32)
    w_d = jax.random.uniform(k_wd, (DEC, HID), dtype=jnp.float32)
    w_out = jax.random.uniform(k_wo, (HID, 1), dtype=jnp.float32)

    # Random valid lengths >= 1 so every row has at least one unmasked token.
    lengths = jax.random.randint(k_len, (B,), 1, T + 1)
    inp_mask = (jnp.arange(T)[None, :] < lengths[:, None]).astype(jnp.float32)

    attn, probs = attention_layer(enc, dec, inp_mask, w_e, w_d, w_out)
    attn = jax.block_until_ready(attn)
    probs = jax.block_until_ready(probs)

    attn_ref, probs_ref = attention_layer_ref(enc, dec, inp_mask,
                                              w_e, w_d, w_out)
    np.testing.assert_allclose(np.asarray(attn), np.asarray(attn_ref),
                               rtol=1e-5, atol=1e-5)
    np.testing.assert_allclose(np.asarray(probs), np.asarray(probs_ref),
                               rtol=1e-5, atol=1e-5)

    print("KERNEL_OK")
</pallas_src>

<mosaic_0001>
module attributes {stable_mosaic.version = 11 : i64} {
  func.func @attention_kernel(%arg0: i32, %arg1: memref<16x8x16xf32, #tpu.memory_space<vmem>>, %arg2: memref<16x32xf32, #tpu.memory_space<vmem>>, %arg3: memref<16x8xf32, #tpu.memory_space<vmem>>, %arg4: memref<16x32xf32, #tpu.memory_space<vmem>>, %arg5: memref<32x32xf32, #tpu.memory_space<vmem>>, %arg6: memref<1x32xf32, #tpu.memory_space<vmem>>, %arg7: memref<16x24xf32, #tpu.memory_space<vmem>>) attributes {dimension_semantics = [#tpu.dimension_semantics<parallel>], iteration_bounds = array<i64: 1>, scalar_prefetch = 0 : i64, scratch_operands = 0 : i64, tpu.core_type = #tpu.core_type<tc>, window_params = [{transform_indices = @transform_0, window_bounds = array<i64: 16, 8, 16>}, {transform_indices = @transform_1, window_bounds = array<i64: 16, 32>}, {transform_indices = @transform_2, window_bounds = array<i64: 16, 8>}, {pipeline_mode = #tpu.pipeline_mode<synchronous>, transform_indices = @transform_3, window_bounds = array<i64: 16, 32>}, {pipeline_mode = #tpu.pipeline_mode<synchronous>, transform_indices = @transform_4, window_bounds = array<i64: 32, 32>}, {pipeline_mode = #tpu.pipeline_mode<synchronous>, transform_indices = @transform_5, window_bounds = array<i64: 1, 32>}, {transform_indices = @transform_6, window_bounds = array<i64: 16, 24>}]} {
    %c0 = arith.constant 0 : index
    %c0_0 = arith.constant 0 : index
    %c0_1 = arith.constant 0 : index
    %0 = vector.load %arg1[%c0, %c0_0, %c0_1] : memref<16x8x16xf32, #tpu.memory_space<vmem>>, vector<16x8x16xf32>
    %1 = vector.shape_cast %0 : vector<16x8x16xf32> to vector<128x16xf32>
    %c0_2 = arith.constant 0 : index
    %c0_3 = arith.constant 0 : index
    %2 = vector.load %arg4[%c0_2, %c0_3] : memref<16x32xf32, #tpu.memory_space<vmem>>, vector<16x32xf32>
    %cst = arith.constant dense<0.000000e+00> : vector<128x32xf32>
    %3 = tpu.matmul %1, %2, %cst {dimension_numbers = #tpu.dot_dimension_numbers<[1], [0], [0], [1], [0, 0, 1, 1], [], []>} : vector<128x16xf32>, vector<16x32xf32>, vector<128x32xf32> -> vector<128x32xf32>
    %4 = vector.shape_cast %3 : vector<128x32xf32> to vector<16x8x32xf32>
    %c0_4 = arith.constant 0 : index
    %c0_5 = arith.constant 0 : index
    %5 = vector.load %arg2[%c0_4, %c0_5] : memref<16x32xf32, #tpu.memory_space<vmem>>, vector<16x32xf32>
    %c0_6 = arith.constant 0 : index
    %c0_7 = arith.constant 0 : index
    %6 = vector.load %arg5[%c0_6, %c0_7] : memref<32x32xf32, #tpu.memory_space<vmem>>, vector<32x32xf32>
    %cst_8 = arith.constant dense<0.000000e+00> : vector<16x32xf32>
    %7 = tpu.matmul %5, %6, %cst_8 {dimension_numbers = #tpu.dot_dimension_numbers<[1], [0], [0], [1], [0, 0, 1, 1], [], []>} : vector<16x32xf32>, vector<32x32xf32>, vector<16x32xf32> -> vector<16x32xf32>
    %8 = vector.shape_cast %7 : vector<16x32xf32> to vector<16x1x32xf32>
    %9 = vector.broadcast %8 : vector<16x1x32xf32> to vector<16x8x32xf32>
    %10 = arith.addf %4, %9 : vector<16x8x32xf32>
    %11 = math.tanh %10 : vector<16x8x32xf32>
    %c0_9 = arith.constant 0 : index
    %c0_10 = arith.constant 0 : index
    %12 = vector.load %arg6[%c0_9, %c0_10] : memref<1x32xf32, #tpu.memory_space<vmem>>, vector<1x32xf32>
    %13 = vector.shape_cast %12 : vector<1x32xf32> to vector<1x1x32xf32>
    %14 = vector.broadcast %13 : vector<1x1x32xf32> to vector<16x8x32xf32>
    %15 = arith.mulf %11, %14 : vector<16x8x32xf32>
    %cst_11 = arith.constant dense<0.000000e+00> : vector<16x8xf32>
    %16 = vector.multi_reduction <add>, %15, %cst_11 [2] : vector<16x8x32xf32> to vector<16x8xf32>
    %c0_12 = arith.constant 0 : index
    %c0_13 = arith.constant 0 : index
    %17 = vector.load %arg3[%c0_12, %c0_13] : memref<16x8xf32, #tpu.memory_space<vmem>>, vector<16x8xf32>
    %cst_14 = arith.constant 0.000000e+00 : f32
    %18 = vector.broadcast %cst_14 : f32 to vector<16x8xf32>
    %19 = arith.cmpf ogt, %17, %18 : vector<16x8xf32>
    %cst_15 = arith.constant -1.000000e+30 : f32
    %20 = vector.broadcast %cst_15 : f32 to vector<16x8xf32>
    %21 = arith.select %19, %16, %20 : vector<16x8xi1>, vector<16x8xf32>
    %cst_16 = arith.constant dense<0xFF800000> : vector<16xf32>
    %22 = vector.multi_reduction <maximumf>, %21, %cst_16 [1] : vector<16x8xf32> to vector<16xf32>
    %23 = vector.shape_cast %22 : vector<16xf32> to vector<16x1xf32>
    %24 = vector.broadcast %23 : vector<16x1xf32> to vector<16x8xf32>
    %25 = arith.subf %21, %24 : vector<16x8xf32>
    %26 = math.exp %25 : vector<16x8xf32>
    %cst_17 = arith.constant dense<0.000000e+00> : vector<16xf32>
    %27 = vector.multi_reduction <add>, %26, %cst_17 [1] : vector<16x8xf32> to vector<16xf32>
    %28 = vector.shape_cast %27 : vector<16xf32> to vector<16x1xf32>
    %29 = tpu.reciprocal %28 : vector<16x1xf32> -> vector<16x1xf32>
    %30 = vector.broadcast %29 : vector<16x1xf32> to vector<16x8xf32>
    %31 = arith.mulf %26, %30 : vector<16x8xf32>
    %32 = vector.shape_cast %31 : vector<16x8xf32> to vector<16x8x1xf32>
    %33 = vector.broadcast %32 : vector<16x8x1xf32> to vector<16x8x16xf32>
    %34 = arith.mulf %33, %0 : vector<16x8x16xf32>
    %cst_18 = arith.constant dense<0.000000e+00> : vector<16x16xf32>
    %35 = vector.multi_reduction <add>, %34, %cst_18 [1] : vector<16x8x16xf32> to vector<16x16xf32>
    %36 = tpu.concatenate %35, %31 in 1 : vector<16x16xf32>, vector<16x8xf32> -> vector<16x24xf32>
    %c0_19 = arith.constant 0 : index
    %c0_20 = arith.constant 0 : index
    %37 = vector.load %arg7[%c0_19, %c0_20] : memref<16x24xf32, #tpu.memory_space<vmem>>, vector<16x24xf32>
    tpu.vector_store %arg7[%c0_19, %c0_20], %36 {strides = array<i32>} : memref<16x24xf32, #tpu.memory_space<vmem>>, vector<16x24xf32>,
    return
  }
  func.func @transform_0(%arg0: i32) -> (i32, i32, i32) {
    %c0_i32 = arith.constant 0 : i32
    %c0_i32_0 = arith.constant 0 : i32
    %c0_i32_1 = arith.constant 0 : i32
    return %arg0, %c0_i32, %c0_i32_0 : i32, i32, i32
  }
  func.func @transform_1(%arg0: i32) -> (i32, i32) {
    %c0_i32 = arith.constant 0 : i32
    %c0_i32_0 = arith.constant 0 : i32
    return %arg0, %c0_i32 : i32, i32
  }
  func.func @transform_2(%arg0: i32) -> (i32, i32) {
    %c0_i32 = arith.constant 0 : i32
    %c0_i32_0 = arith.constant 0 : i32
    return %arg0, %c0_i32 : i32, i32
  }
  func.func @transform_3(%arg0: i32) -> (i32, i32) {
    %c0_i32 = arith.constant 0 : i32
    %c0_i32_0 = arith.constant 0 : i32
    %c0_i32_1 = arith.constant 0 : i32
    return %c0_i32, %c0_i32_0 : i32, i32
  }
  func.func @transform_4(%arg0: i32) -> (i32, i32) {
    %c0_i32 = arith.constant 0 : i32
    %c0_i32_0 = arith.constant 0 : i32
    %c0_i32_1 = arith.constant 0 : i32
    return %c0_i32, %c0_i32_0 : i32, i32
  }
  func.func @transform_5(%arg0: i32) -> (i32, i32) {
    %c0_i32 = arith.constant 0 : i32
    %c0_i32_0 = arith.constant 0 : i32
    %c0_i32_1 = arith.constant 0 : i32
    return %c0_i32, %c0_i32_0 : i32, i32
  }
  func.func @transform_6(%arg0: i32) -> (i32, i32) {
    %c0_i32 = arith.constant 0 : i32
    %c0_i32_0 = arith.constant 0 : i32
    return %arg0, %c0_i32 : i32, i32
  }
}

</mosaic_0001>

<bundles_post_ra>
// kernel: tpu_custom_call.1
= control target key start
LH: loop header
LB: loop body
LE: loop exit
PB: predicated region body
PF: predicated region fallthrough
CT: control target
= control target key end

     0   :  { %11 = vsyncpa [#allocation3], 0  ;;  %s1669_s0 = inlined_call_operand.hbm [shape: f32[16,8,16], index: 0, kind: input, shape index: {}]   ;;  %s1670_s1 = inlined_call_operand.hbm [shape: f32[16,32], index: 1, kind: input, shape index: {}]   ;;  %s1671_s2 = inlined_call_operand.vmem [shape: f32[16,8], index: 2, kind: input, shape index: {}]   ;;  %s1672_s3 = inlined_call_operand.hbm [shape: f32[16,32], index: 3, kind: input, shape index: {}]   ;;  %s1673_s4 = inlined_call_operand.vmem [shape: f32[32,32], index: 4, kind: input, shape index: {}]   ;;  %s1674_s5 = inlined_call_operand.vmem [shape: f32[1,32], index: 5, kind: input, shape index: {}]   ;;  %s1675_s6 = inlined_call_operand.hbm [shape: f32[16,24], index: 6, kind: output, shape index: {}]  }
   0x1   :  { %12 = vsyncpa [#allocation6], 0 }
   0x2   :  { %13 = vsyncpa [#allocation4], 0  ;;  %s1323_s21 = smov [#allocation5]   ;;  %s1324_s23 = smov [#allocation2]  }
   0x3   :  { %s31_s22 = sshll.u32 %s1323_s21, 4  ;;  %s19_s24 = sshll.u32 %s1324_s23, 4  ;;  %s32_s22 = int_to_ptr.vmem [resolvable:$true] %s31_s22  ;;  %s1366_s24 = int_to_ptr.vmem [resolvable:$true] %s19_s24 }
   0x4   :  { %s1229_s27 = scalar_lea.hbm %s1670_s1, 256 }
   0x5   :  { %p1230_p0 = scmp.ne.s32.totalorder %s1670_s1, %s1229_s27  ;;  %p1233_p1 = scmp.lt.u32.totalorder %s1229_s27, %s1670_s1 }
   0x7   :  { %p1235_p2 = pnand %p1233_p1, %p1230_p0 }
   0x9   :  { %1238 = shalt.err (!%p1235_p2)
}
   0xa   :  { %s1239_s8 = scalar_lea.vmem %s32_s22, 256  ;;  %p1244_p4 = scmp.lt.s32.totalorder %s32_s22, %s32_s22 }
   0xb   :  { %p1240_p3 = scmp.ne.s32.totalorder %s32_s22, %s1239_s8  ;;  %p1245_p5 = scmp.lt.s32.totalorder %s1239_s8, %s1239_s8 }
   0xd   :  { %p1246_p6 = por %p1245_p5, %p1244_p4 }
   0xf   :  { %p1247_p7 = pnand %p1246_p6, %p1240_p3 }
  0x11   :  { %1250 = shalt.err (!%p1247_p7)
}
  0x12   :  { %s1325_s9 = smov 128   ;;  %s1326_s10 = smov 8  }
  0x13   :  { %37 = dma.hbm_to_vmem [thread:$0]  %s1670_s1, 256, %s32_s22, [#allocation6], %s1325_s9, %s1325_s9, %s1326_s10  }
  0x14   :  { %s1251_s15 = scalar_lea.hbm %s1669_s0, 2048 }
  0x15   :  { %p1252_p8 = scmp.ne.s32.totalorder %s1669_s0, %s1251_s15  ;;  %p1255_p9 = scmp.lt.u32.totalorder %s1251_s15, %s1669_s0 }
  0x17   :  { %p1257_p10 = pnand %p1255_p9, %p1252_p8 }
  0x19   :  { %1260 = shalt.err (!%p1257_p10)
}
  0x1a   :  { %s1261_s20 = scalar_lea.vmem %s1366_s24, 2048  ;;  %p1266_p12 = scmp.lt.s32.totalorder %s1366_s24, %s1366_s24 }
  0x1b   :  { %p1262_p11 = scmp.ne.s32.totalorder %s1366_s24, %s1261_s20  ;;  %p1267_p13 = scmp.lt.s32.totalorder %s1261_s20, %s1261_s20 }
  0x1d   :  { %p1268_p0 = por %p1267_p13, %p1266_p12 }
  0x1f   :  { %p1269_p1 = pnand %p1268_p0, %p1262_p11 }
  0x21   :  { %1272 = shalt.err (!%p1269_p1)
}
  0x22   :  { %25 = dma.hbm_to_vmem [thread:$0]  %s1669_s0, 2048, %s1366_s24, [#allocation3], %s1325_s9, %s1325_s9, %s1326_s10  }
  0x23   :  { %s1327_s22 = smov [#allocation7]   ;;  %s1273_s27 = scalar_lea.hbm %s1672_s3, 256 }
  0x24   :  { %s45_s23 = sshll.u32 %s1327_s22, 4  ;;  %p1274_p2 = scmp.ne.s32.totalorder %s1672_s3, %s1273_s27  ;;  %s46_s23 = int_to_ptr.vmem [resolvable:$true] %s45_s23 }
  0x25   :  { %p1277_p3 = scmp.lt.u32.totalorder %s1273_s27, %s1672_s3 }
  0x27   :  { %p1279_p4 = pnand %p1277_p3, %p1274_p2 }
  0x29   :  { %1282 = shalt.err (!%p1279_p4)
}
  0x2a   :  { %s1283_s8 = scalar_lea.vmem %s46_s23, 256  ;;  %p1288_p6 = scmp.lt.s32.totalorder %s46_s23, %s46_s23 }
  0x2b   :  { %p1284_p5 = scmp.ne.s32.totalorder %s46_s23, %s1283_s8  ;;  %p1289_p7 = scmp.lt.s32.totalorder %s1283_s8, %s1283_s8 }
  0x2d   :  { %p1290_p8 = por %p1289_p7, %p1288_p6 }
  0x2f   :  { %p1291_p9 = pnand %p1290_p8, %p1284_p5 }
  0x31   :  { %1294 = shalt.err (!%p1291_p9)
}
  0x32   :  { %51 = dma.hbm_to_vmem [thread:$0]  %s1672_s3, 256, %s46_s23, [#allocation6], %s1325_s9, %s1325_s9, %s1326_s10  }
  0x33   :  { %1317 = dma.done.wait [#allocation3], 2048  }
  0x34   :  { %1318 = vsyncadd [#allocation3], 4294965248 }
  0x35   :  { %1319 = dma.done.wait [#allocation6], 512  }
  0x36   :  { %1320 = vsyncadd [#allocation6], 4294966784  ;;  %vm83_vm0 = vcmask 130048   ;;  %v81_v0 = vld [vmem:[#allocation7] sm:$0xff]  ;;  %v82_v1 = vld [vmem:[#allocation7 + $0x8] sm:$0xff]  ;;  %vm283_vm1 = vcmask 261120   ;;  %v371_v33 = vlaneseq }
  0x37   :  { %v1418_v2 = vld [vmem:[#allocation2 + $0x50] sm:$0xff]  ;;  %v1167_v3 = vpack.c.bf16 %v82_v1, %v81_v0  ;;  %v1422_v4 = vld [vmem:[#allocation2] sm:$0xff]  ;;  %v280_v6 = vld [vmem:[%s1673_s4 + $0x8] sm:$0xff]  ;;  %v1328_v31 = vmov 1966171168   ;;  %vm734_vm2 = vcmask 1041409  }
  0x38   :  { %1147 = vmatprep.mubr.msk.f32.mxu1 %vm83_vm0, %v1418_v2  ;;  %v279_v5 = vld [vmem:[%s1673_s4] sm:$0xff]  ;;  %1132 = vmatprep.mubr.msk.f32.mxu0 %vm83_vm0, %v1422_v4  ;;  %v1432_v7 = vld [vmem:[#allocation2 + $0x58] sm:$0xff]  ;;  %v1434_v9 = vld [vmem:[#allocation2 + $0x8] sm:$0xff]  ;;  %v369_v32 = vunpack.c.l.s4 %v1328_v31  ;;  %v1503_v39 = vshrl.u32 %v371_v33, 7  ;;  %vm736_vm3 = vcmask 1042434   ;;  %vm738_vm4 = vcmask 1043459  }
  0x39   :  { %1179 = vmatprep.subr.bf16.mxu1 %v1167_v3  ;;  %1168 = vmatprep.subr.bf16.mxu0 %v1167_v3  ;;  %v1171_v8 = vpack.c.bf16 %v280_v6, %v279_v5  ;;  %v281_v10 = vld [vmem:[%s1673_s4 + $0x10] sm:$0xff]  ;;  %v282_v11 = vld [vmem:[%s1673_s4 + $0x18] sm:$0xff]  ;;  %v1442_v12 = vld [vmem:[#allocation2 + $0x60] sm:$0xff]  ;;  %vm740_vm5 = vcmask 1044484   ;;  %vm742_vm6 = vcmask 1045509   ;;  %vm744_vm7 = vcmask 1046534  }
  0x3a   :  { %1180 = vmatpush3.bf16.msra.mxu1 %v1167_v3  ;;  %1170 = vmatpush3.bf16.msra.mxu0 %v1167_v3  ;;  %v1175_v13 = vpack.c.bf16 %v282_v11, %v281_v10  ;;  %v1444_v14 = vld [vmem:[#allocation2 + $0x10] sm:$0xff]  ;;  %v1452_v15 = vld [vmem:[#allocation2 + $0x68] sm:$0xff]  ;;  %v1454_v16 = vld [vmem:[#allocation2 + $0x18] sm:$0xff]  ;;  %v370_v38 = vunpack.c.0.s8 %v369_v32  ;;  %v1507_v55 = vsub.s32 0, %v1503_v39  ;;  %vm746_vm8 = vcmask 1047559   ;;  %s1330_s21 = smov [#allocation8]  }
  0x3b   :  { %1172 = vmatprep.subr.bf16.mxu1 %v1171_v8  ;;  %v1458_v17 = vld [vmem:[#allocation2 + $0x70] sm:$0xff]  ;;  %v1460_v18 = vld [vmem:[#allocation2 + $0x20] sm:$0xff]  ;;  %v1468_v19 = vld [vmem:[#allocation2 + $0x78] sm:$0xff]  ;;  %vm759_vm10 = vcmask 64512   ;;  %vm1064_vm12 = vcmask 195584   ;;  %s1072_s22 = sshll.u32 %s1330_s21, 4  ;;  %s1073_s22 = int_to_ptr.vmem [resolvable:$true] %s1072_s22 }
  0x3c   :  { %v1470_v20 = vld [vmem:[#allocation2 + $0x28] sm:$0xff]  ;;  %v277_v21 = vld [vmem:[#allocation5] sm:$0xff]  ;;  %v1474_v22 = vld [vmem:[#allocation2 + $0x30] sm:$0xff]  ;;  %v373_v44 = vsub.s32 %v370_v38, %v1503_v39  ;;  %s1295_s23 = scalar_lea.vmem %s1073_s22, 256  ;;  %p1300_p11 = scmp.lt.s32.totalorder %s1073_s22, %s1073_s22 }
  0x3d   :  { %1148 = vmatmul.mubr.msk.f32.vlgmr.msra.gmra.mrb[0].mxu1 %vm83_vm0, %v1432_v7  ;;  %1133 = vmatmul.mubr.msk.f32.vlgmr.msra.gmra.mrb[0].mxu0 %vm83_vm0, %v1434_v9  ;;  %v278_v23 = vld [vmem:[#allocation5 + $0x8] sm:$0xff]  ;;  %v1483_v24 = vld [vmem:[#allocation2 + $0x38] sm:$0xff]  ;;  %v1485_v25 = vld [vmem:[#allocation2 + $0x40] sm:$0xff]  ;;  %p1296_p10 = scmp.ne.s32.totalorder %s1073_s22, %s1295_s23  ;;  %p1301_p12 = scmp.lt.s32.totalorder %s1295_s23, %s1295_s23 }
  0x3e   :  { %1174 = vmatpush3.bf16.msra.mxu1 %v1171_v8  ;;  %1150 = vmatprep.mubr.msk.f32.mxu1 %vm83_vm0, %v1442_v12  ;;  %v1492_v26 = vld [vmem:[#allocation2 + $0x48] sm:$0xff] }
  0x3f   :  { %1135 = vmatprep.mubr.msk.f32.mxu0 %vm83_vm0, %v1444_v14  ;;  %1176 = vmatprep.subr.bf16.mxu1 %v1175_v13  ;;  %p1302_p13 = por %p1301_p12, %p1300_p11 }
  0x41   :  { %1151 = vmatmul.mubr.msk.f32.gmra.mrb[2].mxu1 %vm83_vm0, %v1452_v15  ;;  %1136 = vmatmul.mubr.msk.f32.gmra.mrb[2].mxu0 %vm83_vm0, %v1454_v16  ;;  %p1303_p0 = pnand %p1302_p13, %p1296_p10 }
  0x42   :  { %1153 = vmatprep.mubr.msk.f32.mxu1 %vm83_vm0, %v1458_v17  ;;  %1178 = vmatpush3.bf16.msra.mxu1 %v1175_v13 }
  0x43   :  { %1138 = vmatprep.mubr.msk.f32.mxu0 %vm83_vm0, %v1460_v18 }
  0x45   :  { %1154 = vmatmul.mubr.msk.f32.gmra.mrb[4].mxu1 %vm83_vm0, %v1468_v19  ;;  %1139 = vmatmul.mubr.msk.f32.gmra.mrb[4].mxu0 %vm83_vm0, %v1470_v20 }
  0x46   :  { %1164 = vmatprep.mubr.msk.f32.mxu1 %vm283_vm1, %v277_v21  ;;  %1141 = vmatprep.mubr.msk.f32.mxu0 %vm83_vm0, %v1474_v22 }
  0x49   :  { %1165 = vmatmul.mubr.msk.f32.vlgmr.msra.gmra.mrb[6].mxu1 %vm283_vm1, %v278_v23  ;;  %1142 = vmatmul.mubr.msk.f32.gmra.mrb[6].mxu0 %vm83_vm0, %v1483_v24 }
  0x4a   :  { %1144 = vmatprep.mubr.msk.f32.mxu0 %vm83_vm0, %v1485_v25 }
  0x4d   :  { %1145 = vmatmul.mubr.msk.f32.gmra.mrb[8].mxu0 %vm83_vm0, %v1492_v26 }
 0x110   :  { %v1496_v27 = vpop.f32.mrb[0].mxu1  ;;  %v1498_v28 = vpop.f32.mrb[0].mxu0 }
 0x111   :  { %v248_v29 = vpop.f32.mrb[1].mxu1  ;;  %v1500_v30 = vpop.f32.mrb[1].mxu0 }
 0x114   :  { %v1152_v34 = vpop.f32.mrb[2].mxu1  ;;  %v1137_v35 = vpop.f32.mrb[2].mxu0 }
 0x115   :  { %v258_v36 = vpop.f32.mrb[3].mxu1  ;;  %v208_v37 = vpop.f32.mrb[3].mxu0 }
 0x118   :  { %v1155_v40 = vpop.f32.mrb[4].mxu1  ;;  %v1140_v41 = vpop.f32.mrb[4].mxu0 }
 0x119   :  { %v268_v42 = vpop.f32.mrb[5].mxu1  ;;  %v218_v43 = vpop.f32.mrb[5].mxu0 }
 0x11c   :  { %v1166_v45 = vpop.f32.mrb[6].mxu1  ;;  %v1143_v46 = vpop.f32.mrb[6].mxu0 }
 0x11d   :  { %v416_v47 = vcombine.high %v1166_v45, %v1166_v45  ;;  %v423_v48 = vrot.slane %v1166_v45, %v373_v44  ;;  %v356_v49 = vpop.f32.mrb[7].mxu1  ;;  %v228_v50 = vpop.f32.mrb[7].mxu0 }
 0x11e   :  { %v367_v51 = vcombine.high %v356_v49, %v356_v49  ;;  %v374_v52 = vrot.slane %v356_v49, %v373_v44 }
 0x11f   :  { %v430_v53 = vrot.slane %v416_v47, %v373_v44  ;;  %v439_v54 = vrot.slane %v423_v48, %v373_v44  ;;  %v431_v60 = vcombine.high %v423_v48, %v423_v48 }
 0x120   :  { %v381_v56 = vrot.slane %v367_v51, %v373_v44  ;;  %v382_v57 = vcombine.high %v374_v52, %v374_v52  ;;  %v390_v58 = vrot.slane %v374_v52, %v373_v44  ;;  %v1146_v59 = vpop.f32.mrb[8].mxu0 }
 0x121   :  { %v432_v61 = vcombine.high %v430_v53, %v430_v53  ;;  %v446_v62 = vrot.slane %v430_v53, %v373_v44  ;;  %v461_v63 = vcombine.high %v439_v54, %v439_v54  ;;  %v238_v0 = vpop.f32.mrb[9].mxu0 }
 0x122   :  { %v383_v1 = vcombine.high %v381_v56, %v381_v56  ;;  %v397_v3 = vrot.slane %v381_v56, %v373_v44  ;;  %v404_v5 = vrot.slane %v382_v57, %v373_v44  ;;  %v412_v6 = vcombine.high %v390_v58, %v390_v58 }
 0x123   :  { %v460_v8 = vrot.slane %v432_v61, %v373_v44  ;;  %v462_v10 = vcombine.high %v446_v62, %v446_v62  ;;  %v508_v11 = vrot.slane %v461_v63, %v1507_v55  ;;  %v516_v13 = vrot.slane %v446_v62, %v1507_v55 }
 0x124   :  { %v411_v21 = vrot.slane %v383_v1, %v373_v44  ;;  %v414_v23 = vcombine.high %v404_v5, %v404_v5  ;;  %v468_v31 = vrot.slane %v390_v58, %v1507_v55  ;;  %v472_v32 = vrot.slane %v404_v5, %v1507_v55 }
 0x125   :  { %v464_v38 = vcombine.high %v460_v8, %v460_v8  ;;  %v520_v45 = vrot.slane %v460_v8, %v1507_v55  ;;  %v524_v47 = vrot.slane %v462_v10, %v1507_v55  ;;  %v555_v48 = vadd.f32 %v508_v11, %v248_v29 }
 0x126   :  { %v557_v49 = vadd.f32 %v516_v13, %v258_v36  ;;  %v415_v51 = vcombine.high %v411_v21, %v411_v21  ;;  %v476_v52 = vrot.slane %v412_v6, %v1507_v55  ;;  %v480_v53 = vrot.slane %v414_v23, %v1507_v55 }
 0x127   :  { %v528_v56 = vrot.slane %v464_v38, %v1507_v55  ;;  %v558_v57 = vadd.f32 %v1152_v34, %v520_v45  ;;  %v1518_v61 = vadd.f32 %v524_v47, %v268_v42  ;;  %v484_v58 = vrot.slane %v397_v3, %v1507_v55 }
 0x128   :  { %v488_v62 = vrot.slane %v411_v21, %v1507_v55  ;;  %v496_v63 = vrot.slane %v415_v51, %v1507_v55  ;;  %v453_v1 = vrot.slane %v431_v60, %v373_v44  ;;  %v545_v29 = vadd.f32 %v468_v31, %v1500_v30 }
 0x129   :  { %v1523_v5 = vadd.f32 %v1155_v40, %v528_v56  ;;  %v546_v36 = vadd.f32 %v1498_v28, %v472_v32  ;;  %v547_v6 = vadd.f32 %v476_v52, %v208_v37  ;;  %v548_v8 = vadd.f32 %v1137_v35, %v480_v53  ;;  %v1535_v37 = vld [vmem:[%s1674_s5] ss:$0 sm:$0xff] }
 0x12a   :  { %v549_v10 = vadd.f32 %v484_v58, %v218_v43  ;;  %v550_v11 = vadd.f32 %v1140_v41, %v488_v62  ;;  %v552_v34 = vadd.f32 %v1143_v46, %v496_v63  ;;  %1189 = vtanh.f32 %v545_v29 }
 0x12b   :  { %v413_v42 = vcombine.high %v397_v3, %v397_v3  ;;  %1191 = vtanh.f32 %v546_v36  ;;  %v463_v13 = vcombine.high %v453_v1, %v453_v1  ;;  %v504_v21 = vrot.slane %v453_v1, %v1507_v55 }
 0x12c   :  { %v500_v23 = vrot.slane %v439_v54, %v1507_v55  ;;  %1193 = vtanh.f32 %v547_v6 }
 0x12d   :  { %v492_v40 = vrot.slane %v413_v42, %v1507_v55  ;;  %v512_v44 = vrot.slane %v463_v13, %v1507_v55  ;;  %v554_v30 = vadd.f32 %v1146_v59, %v504_v21  ;;  %1195 = vtanh.f32 %v549_v10 }
 0x12e   :  { %v553_v60 = vadd.f32 %v500_v23, %v238_v0 }
 0x12f   :  { %v551_v28 = vadd.f32 %v492_v40, %v228_v50  ;;  %v556_v35 = vadd.f32 %v1496_v27, %v512_v44  ;;  %1197 = vtanh.f32 %v554_v30 }
 0x130   :  { %1199 = vtanh.f32 %v553_v60 }
 0x131   :  { %1201 = vtanh.f32 %v548_v8 }
 0x132   :  { %1203 = vtanh.f32 %v555_v48 }
 0x133   :  { %1205 = vtanh.f32 %v550_v11 }
 0x134   :  { %v1190_v41 = vpop.eup %1189  ;;  %1207 = vtanh.f32 %v557_v49 }
 0x135   :  { %v1192_v43 = vpop.eup %1191  ;;  %v584_v46 = vmul.f32 %v1190_v41, %v1535_v37  ;;  %1209 = vtanh.f32 %v551_v28 }
 0x136   :  { %v585_v59 = vmul.f32 %v1192_v43, %v1535_v37  ;;  %v1194_v50 = vpop.eup %1193  ;;  %1211 = vtanh.f32 %v556_v35 }
 0x137   :  { %v600_v54 = vsel %vm283_vm1, %v584_v46, 0.0  ;;  %v586_v0 = vmul.f32 %v1194_v50, %v1535_v37  ;;  %v1196_v3 = vpop.eup %1195  ;;  %1213 = vtanh.f32 %v552_v34 }
 0x138   :  { %601 = vadd.xlane.f32.xlu0 %v600_v54  ;;  %v603_v27 = vsel %vm283_vm1, %v585_v59, 0.0  ;;  %v588_v47 = vmul.f32 %v1196_v3, %v1535_v37  ;;  %1215 = vtanh.f32 %v558_v57 }
 0x139   :  { %v1198_v31 = vpop.eup %1197  ;;  %v606_v45 = vsel %vm283_vm1, %v586_v0, 0.0  ;;  %1217 = vtanh.f32 %v1518_v61 }
 0x13a   :  { %v1200_v32 = vpop.eup %1199  ;;  %v593_v52 = vmul.f32 %v1198_v31, %v1535_v37  ;;  %v612_v49 = vsel %vm283_vm1, %v588_v47, 0.0  ;;  %1219 = vtanh.f32 %v1523_v5  ;;  %v669_v31 = vand.u32 127, %v371_v33 }
 0x13b   :  { %v592_v38 = vmul.f32 %v1200_v32, %v1535_v37  ;;  %v1202_v51 = vpop.eup %1201 }
 0x13c   :  { %604 = vadd.xlane.f32.xlu0 %v603_v27  ;;  %v1204_v53 = vpop.eup %1203  ;;  %v587_v56 = vmul.f32 %v1202_v51, %v1535_v37  ;;  %v627_v62 = vsel %vm283_vm1, %v593_v52, 0.0 }
 0x13d   :  { %v624_v48 = vsel %vm283_vm1, %v592_v38, 0.0  ;;  %v1206_v58 = vpop.eup %1205  ;;  %v594_v63 = vmul.f32 %v1204_v53, %v1535_v37 }
 0x13e   :  { %625 = vadd.xlane.f32.xlu1 %v624_v48  ;;  %v1208_v1 = vpop.eup %1207  ;;  %v609_v29 = vsel %vm283_vm1, %v587_v56, 0.0  ;;  %v589_v36 = vmul.f32 %v1206_v58, %v1535_v37 }
 0x13f   :  { %v1210_v6 = vpop.eup %1209  ;;  %v630_v8 = vsel %vm283_vm1, %v594_v63, 0.0  ;;  %v596_v10 = vmul.f32 %v1208_v1, %v1535_v37 }
 0x140   :  { %607 = vadd.xlane.f32.xlu0 %v606_v45  ;;  %v1212_v57 = vpop.eup %1211  ;;  %v615_v11 = vsel %vm283_vm1, %v589_v36, 0.0  ;;  %v590_v34 = vmul.f32 %v1210_v6, %v1535_v37  ;;  %v672_v45 = vsub.s32 %v669_v31, %v1503_v39  ;;  %v648_v6 = vld [vmem:[%s1671_s2] sm:$0xff] }
 0x141   :  { %v1214_v42 = vpop.eup %1213  ;;  %v636_v13 = vsel %vm283_vm1, %v596_v10, 0.0  ;;  %v595_v21 = vmul.f32 %v1212_v57, %v1535_v37  ;;  %vm650_vm9 = vcmp.gt.f32.partialorder %v648_v6, 0.0 }
 0x142   :  { %628 = vadd.xlane.f32.xlu1 %v627_v62  ;;  %v1216_v61 = vpop.eup %1215  ;;  %v618_v23 = vsel %vm283_vm1, %v590_v34, 0.0  ;;  %v591_v40 = vmul.f32 %v1214_v42, %v1535_v37 }
 0x143   :  { %v633_v44 = vsel %vm283_vm1, %v595_v21, 0.0  ;;  %v597_v30 = vmul.f32 %v1216_v61, %v1535_v37  ;;  %v1218_v60 = vpop.eup %1217 }
 0x144   :  { %613 = vadd.xlane.f32.xlu0 %v612_v49  ;;  %v621_v28 = vsel %vm283_vm1, %v591_v40, 0.0  ;;  %v598_v35 = vmul.f32 %v1218_v60, %v1535_v37  ;;  %v1220_v41 = vpop.eup %1219 }
 0x145   :  { %v639_v5 = vsel %vm283_vm1, %v597_v30, 0.0  ;;  %v599_v46 = vmul.f32 %v1220_v41, %v1535_v37 }
 0x146   :  { %631 = vadd.xlane.f32.xlu1 %v630_v8  ;;  %v642_v43 = vsel %vm283_vm1, %v598_v35, 0.0 }
 0x147   :  { %v645_v54 = vsel %vm283_vm1, %v599_v46, 0.0 }
 0x148   :  { %610 = vadd.xlane.f32.xlu0 %v609_v29 }
 0x14a   :  { %637 = vadd.xlane.f32.xlu1 %v636_v13 }
 0x14c   :  { %616 = vadd.xlane.f32.xlu0 %v615_v11 }
 0x14e   :  { %634 = vadd.xlane.f32.xlu1 %v633_v44 }
 0x150   :  { %619 = vadd.xlane.f32.xlu0 %v618_v23 }
 0x152   :  { %640 = vadd.xlane.f32.xlu1 %v639_v5 }
 0x154   :  { %622 = vadd.xlane.f32.xlu0 %v621_v28 }
 0x156   :  { %643 = vadd.xlane.f32.xlu1 %v642_v43 }
 0x15a   :  { %646 = vadd.xlane.f32.xlu1 %v645_v54  ;;  %v649_v54 = vld [vmem:[%s1671_s2 + $0x8] sm:$0xff]  ;;  %s1329_s2 = smov 16  }
 0x15b   :  { %vm651_vm11 = vcmp.gt.f32.partialorder %v649_v54, 0.0 }
 0x1c5   :  { %v602_v59 = vpop.xlane.xlu0 %601 }
 0x1c6   :  { %v673_v52 = vrot.slane %v602_v59, %v672_v45 }
 0x1c9   :  { %v605_v50 = vpop.xlane.xlu0 %604 }
 0x1ca   :  { %v677_v51 = vrot.slane %v605_v50, %v672_v45 }
 0x1cb   :  { %v626_v0 = vpop.xlane.xlu1 %625 }
 0x1cc   :  { %v735_v56 = vsel %vm734_vm2, %v677_v51, %v673_v52  ;;  %v705_v61 = vrot.slane %v626_v0, %v672_v45 }
 0x1cd   :  { %v608_v27 = vpop.xlane.xlu0 %607 }
 0x1ce   :  { %v681_v48 = vrot.slane %v608_v27, %v672_v45 }
 0x1cf   :  { %v629_v32 = vpop.xlane.xlu1 %628 }
 0x1d0   :  { %v737_v58 = vsel %vm736_vm3, %v681_v48, %v735_v56  ;;  %v709_v57 = vrot.slane %v629_v32, %v672_v45 }
 0x1d1   :  { %v614_v3 = vpop.xlane.xlu0 %613 }
 0x1d2   :  { %v689_v1 = vrot.slane %v614_v3, %v672_v45  ;;  %v748_v30 = vsel %vm734_vm2, %v709_v57, %v705_v61  ;;  %v819_v61 = vsub.s32 5, %v1503_v39 }
 0x1d3   :  { %v632_v47 = vpop.xlane.xlu1 %631 }
 0x1d4   :  { %v713_v42 = vrot.slane %v632_v47, %v672_v45 }
 0x1d5   :  { %v611_v38 = vpop.xlane.xlu0 %610 }
 0x1d6   :  { %v685_v53 = vrot.slane %v611_v38, %v672_v45  ;;  %v749_v28 = vsel %vm736_vm3, %v713_v42, %v748_v30 }
 0x1d7   :  { %v638_v49 = vpop.xlane.xlu1 %637 }
 0x1d8   :  { %v739_v33 = vsel %vm738_vm4, %v685_v53, %v737_v58  ;;  %v721_v43 = vrot.slane %v638_v49, %v672_v45 }
 0x1d9   :  { %v617_v37 = vpop.xlane.xlu0 %616  ;;  %v741_v8 = vsel %vm740_vm5, %v689_v1, %v739_v33 }
 0x1da   :  { %v693_v63 = vrot.slane %v617_v37, %v672_v45 }
 0x1db   :  { %v635_v29 = vpop.xlane.xlu1 %634 }
 0x1dc   :  { %v743_v11 = vsel %vm742_vm6, %v693_v63, %v741_v8  ;;  %v717_v23 = vrot.slane %v635_v29, %v672_v45  ;;  %v805_v8 = vsub.s32 3, %v1503_v39 }
 0x1dd   :  { %v620_v62 = vpop.xlane.xlu0 %619 }
 0x1de   :  { %v697_v36 = vrot.slane %v620_v62, %v672_v45  ;;  %v750_v35 = vsel %vm738_vm4, %v717_v23, %v749_v28  ;;  %v833_v28 = vsub.s32 7, %v1503_v39 }
 0x1df   :  { %v641_v13 = vpop.xlane.xlu1 %640  ;;  %v751_v59 = vsel %vm740_vm5, %v721_v43, %v750_v35 }
 0x1e0   :  { %v745_v21 = vsel %vm744_vm7, %v697_v36, %v743_v11  ;;  %v725_v41 = vrot.slane %v641_v13, %v672_v45  ;;  %v798_v36 = vsub.s32 2, %v1503_v39  ;;  %v791_v13 = vsub.s32 1, %v1503_v39 }
 0x1e1   :  { %v623_v10 = vpop.xlane.xlu0 %622 }
 0x1e2   :  { %v701_v34 = vrot.slane %v623_v10, %v672_v45  ;;  %v752_v27 = vsel %vm742_vm6, %v725_v41, %v751_v59 }
 0x1e3   :  { %v644_v5 = vpop.xlane.xlu1 %643 }
 0x1e4   :  { %v747_v40 = vsel %vm746_vm8, %v701_v34, %v745_v21  ;;  %v729_v46 = vrot.slane %v644_v5, %v672_v45  ;;  %v812_v34 = vsub.s32 4, %v1503_v39 }
 0x1e5   :  { %v757_v44 = vsel %vm650_vm9, %v747_v40, -1e+30 }
 0x1e6   :  { %v760_v60 = vsel %vm759_vm10, %v757_v44, -inf  ;;  %v753_v3 = vsel %vm744_vm7, %v729_v46, %v752_v27 }
 0x1e7   :  { %761 = vmax.xlane.f32.xlu0 %v760_v60  ;;  %v647_v50 = vpop.xlane.xlu1 %646 }
 0x1e8   :  { %v733_v0 = vrot.slane %v647_v50, %v672_v45 }
 0x1ea   :  { %v754_v31 = vsel %vm746_vm8, %v733_v0, %v753_v3 }
 0x1eb   :  { %v758_v32 = vsel %vm651_vm11, %v754_v31, -1e+30 }
 0x1ec   :  { %v763_v38 = vsel %vm759_vm10, %v758_v32, -inf }
 0x1ed   :  { %764 = vmax.xlane.f32.xlu1 %v763_v38 }
 0x274   :  { %v762_v47 = vpop.xlane.xlu0 %761 }
 0x275   :  { %v766_v51 = vsub.f32 %v757_v44, %v762_v47  ;;  %v826_v44 = vsub.s32 6, %v1503_v39 }
 0x277   :  { %v768_v48 = vmul.f32 1.442695, %v766_v51 }
 0x279   :  { %1221 = vpow2.f32 %v768_v48 }
 0x27a   :  { %v765_v37 = vpop.xlane.xlu1 %764 }
 0x27b   :  { %v767_v52 = vsub.f32 %v758_v32, %v765_v37 }
 0x27d   :  { %v770_v53 = vmul.f32 1.442695, %v767_v52 }
 0x27f   :  { %1223 = vpow2.f32 %v770_v53 }
 0x283   :  { %v1222_v49 = vpop.eup %1221 }
 0x284   :  { %v772_v45 = vsel %vm759_vm10, %v1222_v49, 0.0 }
 0x285   :  { %773 = vadd.xlane.f32.xlu0 %v772_v45 }
 0x289   :  { %v1224_v56 = vpop.eup %1223 }
 0x28a   :  { %v775_v58 = vsel %vm759_vm10, %v1224_v56, 0.0 }
 0x28b   :  { %776 = vadd.xlane.f32.xlu1 %v775_v58 }
 0x312   :  { %v774_v62 = vpop.xlane.xlu0 %773 }
 0x313   :  { %1225 = vrcp.f32 %v774_v62 }
 0x318   :  { %v777_v33 = vpop.xlane.xlu1 %776 }
 0x319   :  { %1227 = vrcp.f32 %v777_v33 }
 0x31d   :  { %v1226_v63 = vpop.eup %1225 }
 0x31e   :  { %v780_v1 = vmul.f32 %v1226_v63, %v1222_v49 }
 0x320   :  { %v785_v29 = vrot.slane %v780_v1, %v1507_v55  ;;  %v799_v6 = vrot.slane %v780_v1, %v798_v36  ;;  %v806_v11 = vrot.slane %v780_v1, %v805_v8  ;;  %v813_v21 = vrot.slane %v780_v1, %v812_v34 }
 0x321   :  { %v820_v40 = vrot.slane %v780_v1, %v819_v61  ;;  %v827_v60 = vrot.slane %v780_v1, %v826_v44  ;;  %v834_v5 = vrot.slane %v780_v1, %v833_v28  ;;  %v792_v43 = vrot.slane %v780_v1, %v791_v13 }
 0x322   :  { %787 = vbcast.lane.b32.xlu0 %v785_v29, 256 }
 0x323   :  { %v1228_v10 = vpop.eup %1227 }
 0x324   :  { %v781_v57 = vmul.f32 %v1228_v10, %v1224_v56 }
 0x326   :  { %801 = vbcast.lane.b32.xlu0 %v799_v6, 256  ;;  %v841_v42 = vrot.slane %v781_v57, %v1507_v55  ;;  %v848_v23 = vrot.slane %v781_v57, %v791_v13  ;;  %v855_v30 = vrot.slane %v781_v57, %v798_v36  ;;  %v862_v55 = vrot.slane %v781_v57, %v805_v8 }
 0x327   :  { %v869_v35 = vrot.slane %v781_v57, %v812_v34  ;;  %v876_v41 = vrot.slane %v781_v57, %v819_v61  ;;  %v883_v46 = vrot.slane %v781_v57, %v826_v44  ;;  %v890_v54 = vrot.slane %v781_v57, %v833_v28 }
 0x328   :  { %843 = vbcast.lane.b32.xlu1 %v841_v42, 256 }
 0x32a   :  { %808 = vbcast.lane.b32.xlu0 %v806_v11, 256 }
 0x32c   :  { %850 = vbcast.lane.b32.xlu1 %v848_v23, 256 }
 0x32e   :  { %815 = vbcast.lane.b32.xlu0 %v813_v21, 256 }
 0x330   :  { %857 = vbcast.lane.b32.xlu1 %v855_v30, 256 }
 0x332   :  { %822 = vbcast.lane.b32.xlu0 %v820_v40, 256 }
 0x334   :  { %864 = vbcast.lane.b32.xlu1 %v862_v55, 256 }
 0x336   :  { %829 = vbcast.lane.b32.xlu0 %v827_v60, 256 }
 0x338   :  { %871 = vbcast.lane.b32.xlu1 %v869_v35, 256 }
 0x33a   :  { %836 = vbcast.lane.b32.xlu0 %v834_v5, 256 }
 0x33c   :  { %878 = vbcast.lane.b32.xlu1 %v876_v41, 256 }
 0x33e   :  { %1056 = vrot.lane.b32.xlu0 %v780_v1, %s1329_s2 }
 0x340   :  { %794 = vbcast.lane.b32.xlu1 %v792_v43, 256 }
 0x344   :  { %885 = vbcast.lane.b32.xlu1 %v883_v46, 256 }
 0x348   :  { %892 = vbcast.lane.b32.xlu1 %v890_v54, 256 }
 0x34c   :  { %1058 = vrot.lane.b32.xlu1 %v781_v57, %s1329_s2 }
 0x394   :  { %v788_v59 = vpop.permute.xlu0 %787 }
 0x395   :  { %v894_v27 = vmul.f32 %v788_v59, %v1422_v4 }
 0x397   :  { %v910_v32 = vsel %vm83_vm0, %v894_v27, 0.0 }
 0x398   :  { %v802_v39 = vpop.permute.xlu0 %801  ;;  %v911_v51 = vrot.slane %v910_v32, 4 }
 0x399   :  { %v896_v3 = vmul.f32 %v802_v39, %v1444_v14 }
 0x39a   :  { %v844_v0 = vpop.permute.xlu1 %843  ;;  %v912_v4 = vadd.f32 %v911_v51, %v910_v32 }
 0x39b   :  { %v924_v47 = vsel %vm83_vm0, %v896_v3, 0.0  ;;  %v902_v37 = vmul.f32 %v844_v0, %v1485_v25 }
 0x39c   :  { %v809_v50 = vpop.permute.xlu0 %808  ;;  %v925_v52 = vrot.slane %v924_v47, 4  ;;  %v913_v36 = vrot.slane %v912_v4, 2 }
 0x39d   :  { %v897_v53 = vmul.f32 %v809_v50, %v1454_v16  ;;  %v966_v14 = vsel %vm83_vm0, %v902_v37, 0.0 }
 0x39e   :  { %v851_v38 = vpop.permute.xlu1 %850  ;;  %v926_v58 = vadd.f32 %v925_v52, %v924_v47  ;;  %v967_v16 = vrot.slane %v966_v14, 4  ;;  %v914_v61 = vadd.f32 %v913_v36, %v912_v4 }
 0x39f   :  { %v903_v45 = vmul.f32 %v851_v38, %v1492_v26  ;;  %v931_v62 = vsel %vm83_vm0, %v897_v53, 0.0 }
 0x3a0   :  { %v816_v31 = vpop.permute.xlu0 %815  ;;  %v932_v6 = vrot.slane %v931_v62, 4  ;;  %v927_v10 = vrot.slane %v926_v58, 2  ;;  %v968_v21 = vadd.f32 %v967_v16, %v966_v14  ;;  %v915_v46 = vrot.slane %v914_v61, 1 }
 0x3a1   :  { %v973_v1 = vsel %vm83_vm0, %v903_v45, 0.0  ;;  %v898_v29 = vmul.f32 %v816_v31, %v1460_v18 }
 0x3a2   :  { %v858_v49 = vpop.permute.xlu1 %857  ;;  %v974_v57 = vrot.slane %v973_v1, 4  ;;  %v933_v23 = vadd.f32 %v932_v6, %v931_v62  ;;  %v928_v28 = vadd.f32 %v927_v10, %v926_v58  ;;  %v969_v43 = vrot.slane %v968_v21, 2 }
 0x3a3   :  { %v904_v33 = vmul.f32 %v858_v49, %v1418_v2  ;;  %v938_v13 = vsel %vm83_vm0, %v898_v29, 0.0  ;;  %v916_v52 = vadd.f32 %v915_v46, %v914_v61 }
 0x3a4   :  { %v823_v48 = vpop.permute.xlu0 %822  ;;  %v975_v60 = vadd.f32 %v974_v57, %v973_v1  ;;  %v939_v55 = vrot.slane %v938_v13, 4  ;;  %v934_v54 = vrot.slane %v933_v23, 2  ;;  %v929_v0 = vrot.slane %v928_v28, 1 }
 0x3a5   :  { %v899_v26 = vmul.f32 %v823_v48, %v1470_v20  ;;  %v980_v11 = vsel %vm83_vm0, %v904_v33, 0.0  ;;  %v970_v37 = vadd.f32 %v969_v43, %v968_v21 }
 0x3a6   :  { %v865_v63 = vpop.permute.xlu1 %864  ;;  %v981_v40 = vrot.slane %v980_v11, 4  ;;  %v940_v3 = vadd.f32 %v939_v55, %v938_v13  ;;  %v976_v47 = vrot.slane %v975_v60, 2  ;;  %v935_v53 = vadd.f32 %v934_v54, %v933_v23 }
 0x3a7   :  { %v905_v25 = vmul.f32 %v865_v63, %v1432_v7  ;;  %v945_v20 = vsel %vm83_vm0, %v899_v26, 0.0  ;;  %v930_v58 = vadd.f32 %v929_v0, %v928_v28 }
 0x3a8   :  { %v830_v56 = vpop.permute.xlu0 %829  ;;  %v946_v41 = vrot.slane %v945_v20, 4  ;;  %v982_v59 = vadd.f32 %v981_v40, %v980_v11  ;;  %v941_v62 = vrot.slane %v940_v3, 2  ;;  %v936_v6 = vrot.slane %v935_v53, 1 }
 0x3a9   :  { %v987_v34 = vsel %vm83_vm0, %v905_v25, 0.0  ;;  %v900_v42 = vmul.f32 %v830_v56, %v1474_v22  ;;  %v977_v25 = vadd.f32 %v976_v47, %v975_v60 }
 0x3aa   :  { %v872_v2 = vpop.permute.xlu1 %871  ;;  %v988_v44 = vrot.slane %v987_v34, 4  ;;  %v947_v48 = vadd.f32 %v946_v41, %v945_v20  ;;  %v983_v45 = vrot.slane %v982_v59, 2 }
 0x3ab   :  { %v906_v7 = vmul.f32 %v872_v2, %v1442_v12  ;;  %v952_v22 = vsel %vm83_vm0, %v900_v42, 0.0  ;;  %v942_v2 = vadd.f32 %v941_v62, %v940_v3  ;;  %v978_v21 = vrot.slane %v977_v25, 1 }
 0x3ac   :  { %v837_v8 = vpop.permute.xlu0 %836  ;;  %v989_v39 = vadd.f32 %v988_v44, %v987_v34  ;;  %v953_v27 = vrot.slane %v952_v22, 4  ;;  %v948_v16 = vrot.slane %v947_v48, 2  ;;  %v984_v10 = vadd.f32 %v983_v45, %v982_v59 }
 0x3ad   :  { %v901_v18 = vmul.f32 %v837_v8, %v1483_v24  ;;  %v994_v30 = vsel %vm83_vm0, %v906_v7, 0.0  ;;  %v943_v43 = vrot.slane %v942_v2, 1 }
 0x3ae   :  { %v879_v5 = vpop.permute.xlu1 %878  ;;  %v995_v35 = vrot.slane %v994_v30, 4  ;;  %v990_v4 = vrot.slane %v989_v39, 2  ;;  %v954_v56 = vadd.f32 %v953_v27, %v952_v22  ;;  %v949_v23 = vadd.f32 %v948_v16, %v947_v48 }
 0x3af   :  { %v907_v12 = vmul.f32 %v879_v5, %v1452_v15  ;;  %v959_v24 = vsel %vm83_vm0, %v901_v18, 0.0  ;;  %v985_v60 = vrot.slane %v984_v10, 1 }
 0x3b0   :  { %v960_v38 = vrot.slane %v959_v24, 4  ;;  %v996_v51 = vadd.f32 %v995_v35, %v994_v30  ;;  %v991_v57 = vadd.f32 %v990_v4, %v989_v39  ;;  %v955_v11 = vrot.slane %v954_v56, 2 }
 0x3b1   :  { %v1001_v50 = vsel %vm83_vm0, %v907_v12, 0.0  ;;  %v950_v54 = vrot.slane %v949_v23, 1  ;;  %v986_v0 = vadd.f32 %v985_v60, %v984_v10 }
 0x3b2   :  { %v1002_v31 = vrot.slane %v1001_v50, 4  ;;  %v795_v32 = vpop.permute.xlu1 %794  ;;  %v961_v63 = vadd.f32 %v960_v38, %v959_v24  ;;  %v997_v29 = vrot.slane %v996_v51, 2  ;;  %v992_v28 = vrot.slane %v991_v57, 1 }
 0x3b3   :  { %v895_v15 = vmul.f32 %v795_v32, %v1434_v9  ;;  %v971_v9 = vrot.slane %v970_v37, 1  ;;  %v956_v55 = vadd.f32 %v955_v11, %v954_v56  ;;  %v979_v24 = vadd.f32 %v978_v21, %v977_v25 }
 0x3b4   :  { %v1003_v49 = vadd.f32 %v1002_v31, %v1001_v50  ;;  %v962_v13 = vrot.slane %v961_v63, 2  ;;  %v998_v61 = vadd.f32 %v997_v29, %v996_v51  ;;  %v993_v3 = vadd.f32 %v992_v28, %v991_v57 }
 0x3b5   :  { %v917_v14 = vsel %vm83_vm0, %v895_v15, 0.0  ;;  %v972_v27 = vadd.f32 %v971_v9, %v970_v37  ;;  %v957_v31 = vrot.slane %v956_v55, 1  ;;  %v944_v15 = vadd.f32 %v943_v43, %v942_v2 }
 0x3b6   :  { %v918_v33 = vrot.slane %v917_v14, 4  ;;  %v886_v1 = vpop.permute.xlu1 %885  ;;  %v1004_v26 = vrot.slane %v1003_v49, 2  ;;  %v963_v35 = vadd.f32 %v962_v13, %v961_v63  ;;  %v999_v46 = vrot.slane %v998_v61, 1 }
 0x3b7   :  { %v908_v36 = vmul.f32 %v886_v1, %v1458_v17  ;;  %v937_v17 = vadd.f32 %v936_v6, %v935_v53  ;;  %v1045_v48 = vsel %vm734_vm2, %v979_v24, %v972_v27  ;;  %v951_v45 = vadd.f32 %v950_v54, %v949_v23 }
 0x3b8   :  { %v919_v8 = vadd.f32 %v918_v33, %v917_v14  ;;  %v1005_v40 = vadd.f32 %v1004_v26, %v1003_v49  ;;  %v964_v38 = vrot.slane %v963_v35, 1  ;;  %v1000_v53 = vadd.f32 %v999_v46, %v998_v61 }
 0x3b9   :  { %v1008_v34 = vsel %vm83_vm0, %v908_v36, 0.0  ;;  %v1046_v37 = vsel %vm736_vm3, %v986_v0, %v1045_v48  ;;  %v958_v62 = vadd.f32 %v957_v31, %v956_v55  ;;  %v1057_v36 = vpop.permute.xlu0 %1056 }
 0x3ba   :  { %v920_v42 = vrot.slane %v919_v8, 2  ;;  %v1009_v7 = vrot.slane %v1008_v34, 4  ;;  %v893_v18 = vpop.permute.xlu1 %892  ;;  %v1006_v59 = vrot.slane %v1005_v40, 1  ;;  %v1047_v63 = vsel %vm738_vm4, %v993_v3, %v1046_v37 }
 0x3bb   :  { %v909_v20 = vmul.f32 %v893_v18, %v1468_v19  ;;  %v965_v1 = vadd.f32 %v964_v38, %v963_v35 }
 0x3bc   :  { %v921_v44 = vadd.f32 %v920_v42, %v919_v8  ;;  %v1010_v30 = vadd.f32 %v1009_v7, %v1008_v34  ;;  %v1007_v4 = vadd.f32 %v1006_v59, %v1005_v40 }
 0x3bd   :  { %v1015_v5 = vsel %vm83_vm0, %v909_v20, 0.0 }
 0x3be   :  { %v922_v22 = vrot.slane %v921_v44, 1  ;;  %v1011_v41 = vrot.slane %v1010_v30, 2  ;;  %v1016_v12 = vrot.slane %v1015_v5, 4  ;;  %v1059_v11 = vpop.permute.xlu1 %1058 }
 0x3c0   :  { %v923_v39 = vadd.f32 %v922_v22, %v921_v44  ;;  %v1012_v19 = vadd.f32 %v1011_v41, %v1010_v30  ;;  %v1017_v50 = vadd.f32 %v1016_v12, %v1015_v5 }
 0x3c2   :  { %v1038_v32 = vsel %vm734_vm2, %v923_v39, %v916_v52  ;;  %v1013_v47 = vrot.slane %v1012_v19, 1  ;;  %v1018_v51 = vrot.slane %v1017_v50, 2 }
 0x3c3   :  { %v1039_v49 = vsel %vm736_vm3, %v930_v58, %v1038_v32  ;;  %v1048_v58 = vsel %vm740_vm5, %v1000_v53, %v1047_v63 }
 0x3c4   :  { %v1040_v56 = vsel %vm738_vm4, %v937_v17, %v1039_v49  ;;  %v1019_v14 = vadd.f32 %v1018_v51, %v1017_v50  ;;  %v1014_v33 = vadd.f32 %v1013_v47, %v1012_v19  ;;  %v1049_v26 = vsel %vm742_vm6, %v1007_v4, %v1048_v58 }
 0x3c5   :  { %v1041_v52 = vsel %vm740_vm5, %v944_v15, %v1040_v56 }
 0x3c6   :  { %v1042_v25 = vsel %vm742_vm6, %v951_v45, %v1041_v52  ;;  %v1020_v29 = vrot.slane %v1019_v14, 1  ;;  %v1050_v10 = vsel %vm744_vm7, %v1014_v33, %v1049_v26 }
 0x3c7   :  { %v1043_v16 = vsel %vm744_vm7, %v958_v62, %v1042_v25 }
 0x3c8   :  { %v1044_v9 = vsel %vm746_vm8, %v965_v1, %v1043_v16  ;;  %v1021_v6 = vadd.f32 %v1020_v29, %v1019_v14 }
 0x3c9   :  { %v1062_v8 = vsel %vm83_vm0, %v1044_v9, %v1057_v36 }
 0x3ca   :  { %v1051_v57 = vsel %vm746_vm8, %v1021_v6, %v1050_v10  ;;  %1065 = vst.msk [vmem:[#allocation8] sm:$0xff] %vm1064_vm12, %v1062_v8 }
 0x3cb   :  { %v1063_v34 = vsel %vm83_vm0, %v1051_v57, %v1059_v11 }
 0x3cc   :  { %1066 = vst.msk [vmem:[#allocation8 + $0x8] sm:$0xff] %vm1064_vm12, %v1063_v34 }
 0x3cd   :  { %1306 = shalt.err (!%p1303_p0)
}
 0x3ce   :  { %s1307_s27 = scalar_lea.hbm %s1675_s6, 256 }
 0x3cf   :  { %p1308_p1 = scmp.ne.s32.totalorder %s1675_s6, %s1307_s27  ;;  %p1311_p2 = scmp.lt.u32.totalorder %s1307_s27, %s1675_s6 }
 0x3d1   :  { %p1313_p3 = pnand %p1311_p2, %p1308_p1 }
 0x3d3   :  { %1316 = shalt.err (!%p1313_p3)
}
 0x3d4   :  { %1078 = dma.vmem_to_hbm [thread:$0]  %s1073_s22, 256, %s1675_s6, [#allocation4], %s1325_s9, %s1325_s9, %s1326_s10  }
 0x3d5   :  { %1321 = dma.done.wait [#allocation4], 256  }
 0x3d6   :  { %1322 = vsyncadd [#allocation4], 4294967040 }
 0x3d7   :  { %1082 = vsyncpa [#allocation3], 1 }
 0x3d8   :  { %1083 = vsyncpa [#allocation6], 1 }
 0x3d9   :  { %1084 = vsyncpa [#allocation4], 1 }

</bundles_post_ra>
